<compile_context>
chip_gen: v5e
topology: v5e:2x2
jax: 0.10.0
libtpu: 0.0.40
codegen_flags: <defaults>
</compile_context>

<pallas_src>
import functools
import math

import jax
import jax.numpy as jnp
from jax import lax
from jax.experimental import pallas as pl
from jax.experimental.pallas import tpu as pltpu

_LANE = 128


def _round_up(x, m):
    return ((x + m - 1) // m) * m


def critic_kernel(x_ref, w1_ref, b1_ref, w2_ref, b2_ref, w3_ref, b3_ref, o_ref):
    # x_ref : [block_b, num_inputs]  (native layout; MXU contracts it untransposed)
    # w1_ref: [hidden, num_inputs]   b1_ref: [hidden, 1]
    # w2_ref: [hidden, hidden]       b2_ref: [hidden, 1]
    # w3_ref: [hidden, 1]            (fc3 weight as a column)
    # b3_ref: (1,) scalar in SMEM
    # o_ref : [1, block_b]           (lane-dense output tile)
    xt = x_ref[...].astype(w1_ref.dtype)
    # fc1: contract num_inputs of both operands -> feature-major [hidden, block_b].
    h1 = jnp.tanh(
        lax.dot_general(
            w1_ref[...], xt,
            dimension_numbers=(((1,), (1,)), ((), ())),
            preferred_element_type=jnp.float32,
        )
        + b1_ref[...]
    )
    # fc2: [hidden, hidden] x [hidden, block_b]; operands follow w2's dtype
    # (bf16 on v6e/v7x when mxu_bf16=True), accumulation stays f32.
    h2 = jnp.tanh(
        jnp.dot(w2_ref[...], h1.astype(w2_ref.dtype),
                preferred_element_type=jnp.float32)
        + b2_ref[...]
    )
    # fc3: an N=1 MXU matmul wastes the vmatmul/vpop path -> VPU mul + sublane reduce.
    v = jnp.sum(h2 * w3_ref[...], axis=0, keepdims=True) + b3_ref[0]
    o_ref[...] = v.astype(o_ref.dtype)


@functools.partial(jax.jit, static_argnames=("block_b", "mxu_bf16"))
def critic_forward(x, w1, b1, w2, b2, w3, b3, *, block_b=1024, mxu_bf16=False):
    """x: [B, num_inputs]; params in PyTorch convention (W: [out, in], b: [out]).

    block_b : batch tile on the lane axis (multiple of 128; sweep 1024-4096).
    mxu_bf16: stream x and run fc2 with bf16 MXU operands (v6e/v7x); f32 accum.
    """
    B, num_inputs = x.shape
    hidden = w1.shape[0]

    # --- batch tiling -------------------------------------------------------
    # Lane-sized tiles.  For small/medium B, cap the tile at ~ceil(B/2) rounded
    # to 128 so the grid has >= 2 steps and ("parallel",) can shard across the
    # two TensorCores on v7x (harmless on v5e/v6e).
    bb = _round_up(block_b, _LANE)
    half_b = _round_up(-(-B // 2), _LANE)
    bb = max(_LANE, min(bb, half_b))
    B_pad = _round_up(B, bb)
    grid = (B_pad // bb,)

    # Contiguous row pad only -- no transpose pass over HBM.  Padded rows compute
    # tanh(bias)-junk that is sliced off afterwards (harmless).
    x_p = jnp.pad(x, ((0, B_pad - B), (0, 0)))

    if mxu_bf16:
        x_p = x_p.astype(jnp.bfloat16)   # halves the dominant HBM input stream
        w2m = w2.astype(jnp.bfloat16)    # fc2 (the big matmul) in bf16 on the MXU
    else:
        w2m = w2
    w1m = w1  # fc1 stays f32: K = num_inputs is tiny, MXU cost is negligible

    b1c = b1.reshape(hidden, 1).astype(jnp.float32)
    b2c = b2.reshape(hidden, 1).astype(jnp.float32)
    w3c = w3.reshape(hidden, 1).astype(jnp.float32)  # fc3 weight [1,h] -> column
    b3s = b3.reshape(1).astype(jnp.float32)          # scalar bias -> SMEM

    # --- VMEM budget / cost hint --------------------------------------------
    x_bytes = 2 if mxu_bf16 else 4
    weight_bytes = (hidden * num_inputs * 4 + hidden * hidden * x_bytes
                    + (3 * hidden + 1) * 4)
    est = (2 * weight_bytes                    # weights (double-buffered by default)
           + 2 * bb * num_inputs * x_bytes     # double-buffered x tile
           + 2 * bb * 4                        # double-buffered output tile
           + 4 * hidden * bb * 4               # h1/h2 f32 temps + headroom
           + (4 << 20))                        # misc slack
    vmem_limit = int(min(max(est, 16 << 20), 48 << 20))  # fits v7x's 64 MiB VMEM

    cost = pl.CostEstimate(
        flops=int(2 * B_pad * hidden * (num_inputs + hidden + 1)),
        transcendentals=int(2 * B_pad * hidden),
        bytes_accessed=int(B_pad * num_inputs * x_bytes + B_pad * 4 + weight_bytes),
    )

    const = lambda shape: pl.BlockSpec(shape, lambda i: (0, 0))

    out = pl.pallas_call(
        critic_kernel,
        out_shape=jax.ShapeDtypeStruct((1, B_pad), jnp.float32),
        grid_spec=pltpu.PrefetchScalarGridSpec(
            num_scalar_prefetch=0,
            grid=grid,
            in_specs=[
                pl.BlockSpec((bb, num_inputs), lambda i: (i, 0)),   # x tile (native)
                const((hidden, num_inputs)),                        # w1
                const((hidden, 1)),                                 # b1
                const((hidden, hidden)),                            # w2
                const((hidden, 1)),                                 # b2
                const((hidden, 1)),                                 # w3 column
                pl.BlockSpec(memory_space=pltpu.MemorySpace.SMEM),  # b3 scalar
            ],
            out_specs=pl.BlockSpec((1, bb), lambda i: (0, i)),
        ),
        compiler_params=pltpu.CompilerParams(
            dimension_semantics=("parallel",),
            vmem_limit_bytes=vmem_limit,
        ),
        cost_estimate=cost,
    )(x_p, w1m, b1c, w2m, b2c, w3c, b3s)

    # [1, B_pad] -> [B, 1]
    return out[0, :B][:, None]


def init_critic_params(key, num_inputs, hidden_size, dtype=jnp.float32):
    """torch.nn.Linear default init (U(-1/sqrt(fan_in), +1/sqrt(fan_in))),
    with fc3.weight *= 0.1 and fc3.bias *= 0.0 as in the module __init__.
    Parameters stored PyTorch-style: weight [out, in], bias [out]."""
    k1, k2, k3, k4, k5, k6 = jax.random.split(key, 6)

    def uniform(k, shape, fan_in):
        bound = 1.0 / math.sqrt(fan_in)
        return jax.random.uniform(k, shape, dtype, minval=-bound, maxval=bound)

    w1 = uniform(k1, (hidden_size, num_inputs), num_inputs)
    b1 = uniform(k2, (hidden_size,), num_inputs)
    w2 = uniform(k3, (hidden_size, hidden_size), hidden_size)
    b2 = uniform(k4, (hidden_size,), hidden_size)
    w3 = uniform(k5, (1, hidden_size), hidden_size) * 0.1   # fc3.weight.mul_(0.1)
    b3 = uniform(k6, (1,), hidden_size) * 0.0               # fc3.bias.mul_(0.0)
    return w1, b1, w2, b2, w3, b3


def critic_ref(x, w1, b1, w2, b2, w3, b3):
    h1 = jnp.tanh(x @ w1.T + b1)
    h2 = jnp.tanh(h1 @ w2.T + b2)
    return h2 @ w3.T + b3


if __name__ == "__main__":
    key = jax.random.PRNGKey(0)
    k_x, k_p = jax.random.split(key)

    batch = 8
    num_inputs = 4
    hidden_size = 32

    x = jax.random.normal(k_x, (batch, num_inputs), dtype=jnp.float32)
    params = init_critic_params(k_p, num_inputs, hidden_size)
    v_ref = critic_ref(x, *params)

    # Default f32 path (matches the torch f32 module numerics).
    v = jax.block_until_ready(critic_forward(x, *params))
    assert v.shape == (batch, 1), v.shape
    assert jnp.allclose(v, v_ref, atol=1e-5, rtol=1e-5), (v, v_ref)

    # Multi-tile path: exercises grid > 1 (megacore-shardable) and batch padding.
    x2 = jax.random.normal(jax.random.PRNGKey(1), (300, num_inputs), dtype=jnp.float32)
    v2 = jax.block_until_ready(critic_forward(x2, *params))
    assert v2.shape == (300, 1), v2.shape
    assert jnp.allclose(v2, critic_ref(x2, *params), atol=1e-5, rtol=1e-5)

    # Optional bf16-MXU path (v6e/v7x): bf16 input stream + bf16 fc2, f32 accumulate.
    v_bf16 = jax.block_until_ready(critic_forward(x, *params, mxu_bf16=True))
    assert jnp.allclose(v_bf16, v_ref, atol=2e-2, rtol=2e-2), (v_bf16, v_ref)

    print("KERNEL_OK")
</pallas_src>

<mosaic_0001>
module attributes {stable_mosaic.version = 11 : i64} {
  func.func @critic_kernel(%arg0: i32, %arg1: memref<128x4xf32, #tpu.memory_space<vmem>>, %arg2: memref<32x4xf32, #tpu.memory_space<vmem>>, %arg3: memref<32x1xf32, #tpu.memory_space<vmem>>, %arg4: memref<32x32xf32, #tpu.memory_space<vmem>>, %arg5: memref<32x1xf32, #tpu.memory_space<vmem>>, %arg6: memref<32x1xf32, #tpu.memory_space<vmem>>, %arg7: memref<1xf32, #tpu.memory_space<smem>>, %arg8: memref<1x128xf32, #tpu.memory_space<vmem>>) attributes {dimension_semantics = [#tpu.dimension_semantics<parallel>], iteration_bounds = array<i64: 1>, scalar_prefetch = 0 : i64, scratch_operands = 0 : i64, tpu.core_type = #tpu.core_type<tc>, window_params = [{transform_indices = @transform_0, window_bounds = array<i64: 128, 4>}, {pipeline_mode = #tpu.pipeline_mode<synchronous>, transform_indices = @transform_1, window_bounds = array<i64: 32, 4>}, {pipeline_mode = #tpu.pipeline_mode<synchronous>, transform_indices = @transform_2, window_bounds = array<i64: 32, 1>}, {pipeline_mode = #tpu.pipeline_mode<synchronous>, transform_indices = @transform_3, window_bounds = array<i64: 32, 32>}, {pipeline_mode = #tpu.pipeline_mode<synchronous>, transform_indices = @transform_4, window_bounds = array<i64: 32, 1>}, {pipeline_mode = #tpu.pipeline_mode<synchronous>, transform_indices = @transform_5, window_bounds = array<i64: 32, 1>}, {transform_indices = @transform_6, window_bounds = array<i64: 1>}, {transform_indices = @transform_7, window_bounds = array<i64: 1, 128>}]} {
    %c0 = arith.constant 0 : index
    %c0_0 = arith.constant 0 : index
    %0 = vector.load %arg1[%c0, %c0_0] : memref<128x4xf32, #tpu.memory_space<vmem>>, vector<128x4xf32>
    %c0_1 = arith.constant 0 : index
    %c0_2 = arith.constant 0 : index
    %1 = vector.load %arg2[%c0_1, %c0_2] : memref<32x4xf32, #tpu.memory_space<vmem>>, vector<32x4xf32>
    %cst = arith.constant dense<0.000000e+00> : vector<32x128xf32>
    %2 = tpu.matmul %1, %0, %cst {dimension_numbers = #tpu.dot_dimension_numbers<[1], [1], [0], [0], [0, 0, 1, 0], [], []>} : vector<32x4xf32>, vector<128x4xf32>, vector<32x128xf32> -> vector<32x128xf32>
    %c0_3 = arith.constant 0 : index
    %c0_4 = arith.constant 0 : index
    %3 = vector.load %arg3[%c0_3, %c0_4] : memref<32x1xf32, #tpu.memory_space<vmem>>, vector<32x1xf32>
    %4 = vector.broadcast %3 : vector<32x1xf32> to vector<32x128xf32>
    %5 = arith.addf %2, %4 : vector<32x128xf32>
    %6 = math.tanh %5 : vector<32x128xf32>
    %c0_5 = arith.constant 0 : index
    %c0_6 = arith.constant 0 : index
    %7 = vector.load %arg4[%c0_5, %c0_6] : memref<32x32xf32, #tpu.memory_space<vmem>>, vector<32x32xf32>
    %cst_7 = arith.constant dense<0.000000e+00> : vector<32x128xf32>
    %8 = tpu.matmul %7, %6, %cst_7 {dimension_numbers = #tpu.dot_dimension_numbers<[1], [0], [0], [1], [0, 0, 1, 1], [], []>} : vector<32x32xf32>, vector<32x128xf32>, vector<32x128xf32> -> vector<32x128xf32>
    %c0_8 = arith.constant 0 : index
    %c0_9 = arith.constant 0 : index
    %9 = vector.load %arg5[%c0_8, %c0_9] : memref<32x1xf32, #tpu.memory_space<vmem>>, vector<32x1xf32>
    %10 = vector.broadcast %9 : vector<32x1xf32> to vector<32x128xf32>
    %11 = arith.addf %8, %10 : vector<32x128xf32>
    %12 = math.tanh %11 : vector<32x128xf32>
    %c0_10 = arith.constant 0 : index
    %c0_11 = arith.constant 0 : index
    %13 = vector.load %arg6[%c0_10, %c0_11] : memref<32x1xf32, #tpu.memory_space<vmem>>, vector<32x1xf32>
    %14 = vector.broadcast %13 : vector<32x1xf32> to vector<32x128xf32>
    %15 = arith.mulf %12, %14 : vector<32x128xf32>
    %cst_12 = arith.constant dense<0.000000e+00> : vector<128xf32>
    %16 = vector.multi_reduction <add>, %15, %cst_12 [0] : vector<32x128xf32> to vector<128xf32>
    %17 = vector.shape_cast %16 : vector<128xf32> to vector<1x128xf32>
    %c0_13 = arith.constant 0 : index
    %18 = memref.load %arg7[%c0_13] : memref<1xf32, #tpu.memory_space<smem>>
    %19 = vector.broadcast %18 : f32 to vector<1x128xf32>
    %20 = arith.addf %17, %19 : vector<1x128xf32>
    %c0_14 = arith.constant 0 : index
    %c0_15 = arith.constant 0 : index
    %21 = vector.load %arg8[%c0_14, %c0_15] : memref<1x128xf32, #tpu.memory_space<vmem>>, vector<1x128xf32>
    tpu.vector_store %arg8[%c0_14, %c0_15], %20 {strides = array<i32>} : memref<1x128xf32, #tpu.memory_space<vmem>>, vector<1x128xf32>,
    return
  }
  func.func @transform_0(%arg0: i32) -> (i32, i32) {
    %c0_i32 = arith.constant 0 : i32
    %c0_i32_0 = arith.constant 0 : i32
    return %arg0, %c0_i32 : i32, i32
  }
  func.func @transform_1(%arg0: i32) -> (i32, i32) {
    %c0_i32 = arith.constant 0 : i32
    %c0_i32_0 = arith.constant 0 : i32
    %c0_i32_1 = arith.constant 0 : i32
    return %c0_i32, %c0_i32_0 : i32, i32
  }
  func.func @transform_2(%arg0: i32) -> (i32, i32) {
    %c0_i32 = arith.constant 0 : i32
    %c0_i32_0 = arith.constant 0 : i32
    %c0_i32_1 = arith.constant 0 : i32
    return %c0_i32, %c0_i32_0 : i32, i32
  }
  func.func @transform_3(%arg0: i32) -> (i32, i32) {
    %c0_i32 = arith.constant 0 : i32
    %c0_i32_0 = arith.constant 0 : i32
    %c0_i32_1 = arith.constant 0 : i32
    return %c0_i32, %c0_i32_0 : i32, i32
  }
  func.func @transform_4(%arg0: i32) -> (i32, i32) {
    %c0_i32 = arith.constant 0 : i32
    %c0_i32_0 = arith.constant 0 : i32
    %c0_i32_1 = arith.constant 0 : i32
    return %c0_i32, %c0_i32_0 : i32, i32
  }
  func.func @transform_5(%arg0: i32) -> (i32, i32) {
    %c0_i32 = arith.constant 0 : i32
    %c0_i32_0 = arith.constant 0 : i32
    %c0_i32_1 = arith.constant 0 : i32
    return %c0_i32, %c0_i32_0 : i32, i32
  }
  func.func @transform_6(%arg0: i32) -> i32 {
    %c0_i32 = arith.constant 0 : i32
    %c0_i32_0 = arith.constant 0 : i32
    return %c0_i32 : i32
  }
  func.func @transform_7(%arg0: i32) -> (i32, i32) {
    %c0_i32 = arith.constant 0 : i32
    %c0_i32_0 = arith.constant 0 : i32
    return %c0_i32, %arg0 : i32, i32
  }
}

</mosaic_0001>

<bundles_post_ra>
// kernel: critic_forward.1
= control target key start
LH: loop header
LB: loop body
LE: loop exit
PB: predicated region body
PF: predicated region fallthrough
CT: control target
= control target key end

     0   :  { %vm71_vm0 = vcmask 31744   ;;  %v360_v9 = vmov 0   ;;  %vm193_vm1 = vcmask 261120   ;;  %s567_s0 = inlined_call_operand.vmem [shape: f32[128,4], index: 0, kind: input, shape index: {}]   ;;  %s568_s2 = inlined_call_operand.vmem [shape: f32[32,1], index: 2, kind: input, shape index: {}]   ;;  %s569_s4 = inlined_call_operand.vmem [shape: f32[32,1], index: 4, kind: input, shape index: {}]   ;;  %s570_s5 = inlined_call_operand.vmem [shape: f32[32,1], index: 5, kind: input, shape index: {}]   ;;  %s571_s1 = inlined_call_operand.vmem [shape: f32[32,4], index: 1, kind: input, shape index: {}]   ;;  %s572_s3 = inlined_call_operand.vmem [shape: f32[32,32], index: 3, kind: input, shape index: {}]   ;;  %s573_s6 = inlined_call_operand.<no memory space> [shape: f32[1], index: 6, kind: input, shape index: {}]   ;;  %s574_s7 = inlined_call_operand.vmem [shape: f32[1,128], index: 7, kind: output, shape index: {}]  }
   0x1   :  { %v42_v0 = vld [vmem:[%s567_s0 + $0x78] sm:$0xff]  ;;  %v41_v1 = vld [vmem:[%s567_s0 + $0x70] sm:$0xff]  ;;  %v40_v2 = vld [vmem:[%s567_s0 + $0x68] sm:$0xff]  ;;  %341 = vset.pattern.permute.xlu0 %v360_v9  ;;  %342 = vset.pattern.permute.xlu1 %v360_v9 }
   0x2   :  { %309 = vmatpush.xpose.msk.msra.mxu3 %vm71_vm0, %v42_v0  ;;  %308 = vmatpush.xpose.msk.msra.mxu2 %vm71_vm0, %v42_v0  ;;  %v39_v3 = vld [vmem:[%s567_s0 + $0x60] sm:$0xff]  ;;  %v38_v4 = vld [vmem:[%s567_s0 + $0x58] sm:$0xff]  ;;  %v37_v5 = vld [vmem:[%s567_s0 + $0x50] sm:$0xff] }
   0x3   :  { %284 = vmatpush.xpose.msk.msra.mxu0 %vm71_vm0, %v42_v0  ;;  %v36_v6 = vld [vmem:[%s567_s0 + $0x48] sm:$0xff]  ;;  %v50_v7 = vld [vmem:[%s568_s2 + $0x18] sm:$0xff]  ;;  %v35_v8 = vld [vmem:[%s567_s0 + $0x40] sm:$0xff]  ;;  %343 = vset.pattern.permute.xlu2 %v360_v9 }
   0x4   :  { %68 = vperm.xlu0 %341, %v50_v7   ;;  %v48_v10 = vld [vmem:[%s568_s2 + $0x8] sm:$0xff]  ;;  %v34_v11 = vld [vmem:[%s567_s0 + $0x38] sm:$0xff]  ;;  %v49_v12 = vld [vmem:[%s568_s2 + $0x10] sm:$0xff] }
   0x5   :  { %58 = vperm.xlu1 %342, %v48_v10   ;;  %v33_v13 = vld [vmem:[%s567_s0 + $0x30] sm:$0xff]  ;;  %v47_v14 = vld [vmem:[%s568_s2] sm:$0xff]  ;;  %v32_v15 = vld [vmem:[%s567_s0 + $0x28] sm:$0xff] }
   0x6   :  { %311 = vmatpush.xpose.msk.msra.mxu3 %vm71_vm0, %v41_v1  ;;  %310 = vmatpush.xpose.msk.msra.mxu2 %vm71_vm0, %v41_v1  ;;  %v171_v16 = vld [vmem:[%s569_s4 + $0x10] sm:$0xff]  ;;  %v31_v17 = vld [vmem:[%s567_s0 + $0x20] sm:$0xff]  ;;  %v172_v18 = vld [vmem:[%s569_s4 + $0x18] sm:$0xff] }
   0x7   :  { %285 = vmatpush.xpose.msk.msra.mxu0 %vm71_vm0, %v41_v1  ;;  %v30_v19 = vld [vmem:[%s567_s0 + $0x18] sm:$0xff]  ;;  %v240_v20 = vld [vmem:[%s570_s5 + $0x8] sm:$0xff]  ;;  %v29_v21 = vld [vmem:[%s567_s0 + $0x10] sm:$0xff] }
   0x8   :  { %v241_v22 = vld [vmem:[%s570_s5 + $0x10] sm:$0xff]  ;;  %v28_v23 = vld [vmem:[%s567_s0 + $0x8] sm:$0xff]  ;;  %v27_v24 = vld [vmem:[%s567_s0] sm:$0xff] }
   0x9   :  { %v45_v25 = vld [vmem:[%s571_s1 + $0x10] sm:$0xff]  ;;  %v44_v26 = vld [vmem:[%s571_s1 + $0x8] sm:$0xff]  ;;  %v43_v27 = vld [vmem:[%s571_s1] sm:$0xff] }
   0xa   :  { %313 = vmatpush.xpose.msk.msra.mxu3 %vm71_vm0, %v40_v2  ;;  %312 = vmatpush.xpose.msk.msra.mxu2 %vm71_vm0, %v40_v2  ;;  %v46_v28 = vld [vmem:[%s571_s1 + $0x18] sm:$0xff]  ;;  %v169_v37 = vld [vmem:[%s569_s4] sm:$0xff]  ;;  %v170_v43 = vld [vmem:[%s569_s4 + $0x8] sm:$0xff] }
   0xb   :  { %286 = vmatpush.xpose.msk.msra.mxu0 %vm71_vm0, %v40_v2  ;;  %175 = vperm.xlu2 %343, %v169_v37   ;;  %v165_v46 = vld [vmem:[%s572_s3] sm:$0xff]  ;;  %v166_v49 = vld [vmem:[%s572_s3 + $0x8] sm:$0xff]  ;;  %v242_v50 = vld [vmem:[%s570_s5 + $0x18] sm:$0xff] }
   0xc   :  { %63 = vperm.xlu0 %341, %v49_v12   ;;  %v239_v48 = vld [vmem:[%s570_s5] sm:$0xff]  ;;  %v167_v51 = vld [vmem:[%s572_s3 + $0x10] sm:$0xff]  ;;  %v168_v52 = vld [vmem:[%s572_s3 + $0x18] sm:$0xff] }
   0xd   :  { %53 = vperm.xlu1 %342, %v47_v14  }
   0xe   :  { %315 = vmatpush.xpose.msk.msra.mxu3 %vm71_vm0, %v39_v3  ;;  %314 = vmatpush.xpose.msk.msra.mxu2 %vm71_vm0, %v39_v3 }
   0xf   :  { %287 = vmatpush.xpose.msk.msra.mxu0 %vm71_vm0, %v39_v3 }
  0x12   :  { %317 = vmatpush.xpose.msk.msra.mxu3 %vm71_vm0, %v38_v4  ;;  %316 = vmatpush.xpose.msk.msra.mxu2 %vm71_vm0, %v38_v4 }
  0x13   :  { %288 = vmatpush.xpose.msk.msra.mxu0 %vm71_vm0, %v38_v4  ;;  %180 = vperm.xlu2 %343, %v170_v43  }
  0x14   :  { %185 = vperm.xlu0 %341, %v171_v16  }
  0x15   :  { %190 = vperm.xlu1 %342, %v172_v18  }
  0x16   :  { %319 = vmatpush.xpose.msk.msra.mxu3 %vm71_vm0, %v37_v5  ;;  %318 = vmatpush.xpose.msk.msra.mxu2 %vm71_vm0, %v37_v5 }
  0x17   :  { %289 = vmatpush.xpose.msk.msra.mxu0 %vm71_vm0, %v37_v5 }
  0x1a   :  { %321 = vmatpush.xpose.msk.msra.mxu3 %vm71_vm0, %v36_v6  ;;  %320 = vmatpush.xpose.msk.msra.mxu2 %vm71_vm0, %v36_v6 }
  0x1b   :  { %290 = vmatpush.xpose.msk.msra.mxu0 %vm71_vm0, %v36_v6  ;;  %245 = vperm.xlu2 %343, %v239_v48  }
  0x1c   :  { %250 = vperm.xlu0 %341, %v240_v20  }
  0x1d   :  { %255 = vperm.xlu1 %342, %v241_v22  }
  0x1e   :  { %323 = vmatpush.xpose.msk.msra.mxu3 %vm71_vm0, %v35_v8  ;;  %322 = vmatpush.xpose.msk.msra.mxu2 %vm71_vm0, %v35_v8 }
  0x1f   :  { %291 = vmatpush.xpose.msk.msra.mxu0 %vm71_vm0, %v35_v8 }
  0x22   :  { %325 = vmatpush.xpose.msk.msra.mxu3 %vm71_vm0, %v34_v11  ;;  %324 = vmatpush.xpose.msk.msra.mxu2 %vm71_vm0, %v34_v11 }
  0x23   :  { %292 = vmatpush.xpose.msk.msra.mxu0 %vm71_vm0, %v34_v11  ;;  %260 = vperm.xlu2 %343, %v242_v50  }
  0x26   :  { %327 = vmatpush.xpose.msk.msra.mxu3 %vm71_vm0, %v33_v13  ;;  %326 = vmatpush.xpose.msk.msra.mxu2 %vm71_vm0, %v33_v13 }
  0x27   :  { %293 = vmatpush.xpose.msk.msra.mxu0 %vm71_vm0, %v33_v13 }
  0x2a   :  { %329 = vmatpush.xpose.msk.msra.mxu3 %vm71_vm0, %v32_v15  ;;  %328 = vmatpush.xpose.msk.msra.mxu2 %vm71_vm0, %v32_v15 }
  0x2b   :  { %294 = vmatpush.xpose.msk.msra.mxu0 %vm71_vm0, %v32_v15 }
  0x2e   :  { %331 = vmatpush.xpose.msk.msra.mxu3 %vm71_vm0, %v31_v17  ;;  %330 = vmatpush.xpose.msk.msra.mxu2 %vm71_vm0, %v31_v17 }
  0x2f   :  { %295 = vmatpush.xpose.msk.msra.mxu0 %vm71_vm0, %v31_v17 }
  0x32   :  { %333 = vmatpush.xpose.msk.msra.mxu3 %vm71_vm0, %v30_v19  ;;  %332 = vmatpush.xpose.msk.msra.mxu2 %vm71_vm0, %v30_v19 }
  0x33   :  { %296 = vmatpush.xpose.msk.msra.mxu0 %vm71_vm0, %v30_v19 }
  0x36   :  { %335 = vmatpush.xpose.msk.msra.mxu3 %vm71_vm0, %v29_v21  ;;  %334 = vmatpush.xpose.msk.msra.mxu2 %vm71_vm0, %v29_v21 }
  0x37   :  { %297 = vmatpush.xpose.msk.msra.mxu0 %vm71_vm0, %v29_v21  ;;  %v277_v21 = vstv %s573_s6 }
  0x3a   :  { %337 = vmatpush.xpose.msk.msra.mxu3 %vm71_vm0, %v28_v23  ;;  %336 = vmatpush.xpose.msk.msra.mxu2 %vm71_vm0, %v28_v23 }
  0x3b   :  { %298 = vmatpush.xpose.msk.msra.mxu0 %vm71_vm0, %v28_v23 }
  0x3e   :  { %339 = vmatpush.xpose.msk.msra.mxu3 %vm71_vm0, %v27_v24  ;;  %338 = vmatpush.xpose.msk.msra.mxu2 %vm71_vm0, %v27_v24 }
  0x3f   :  { %299 = vmatpush.xpose.msk.msra.mxu0 %vm71_vm0, %v27_v24 }
  0x41   :  { %302 = vmatmul.msk.f32.vlgmr.msra.gmra.mxu3 %vm71_vm0, %v45_v25  ;;  %301 = vmatmul.msk.f32.vlgmr.msra.gmra.mxu2 %vm71_vm0, %v44_v26 }
  0x42   :  { %300 = vmatmul.msk.f32.vlgmr.msra.gmra.mxu0 %vm71_vm0, %v43_v27 }
  0x49   :  { %303 = vmatmul.msk.f32.gmra.mxu3 %vm71_vm0, %v46_v28 }
  0x65   :  { %v176_v54 = vpop.permute.xlu2 %175 }
  0x6d   :  { %v181_v56 = vpop.permute.xlu2 %180 }
  0x75   :  { %v246_v63 = vpop.permute.xlu2 %245 }
  0x76   :  { %v69_v29 = vpop.permute.xlu0 %68 }
  0x77   :  { %v59_v31 = vpop.permute.xlu1 %58 }
  0x7d   :  { %v261_v12 = vpop.permute.xlu2 %260 }
  0x7e   :  { %v64_v32 = vpop.permute.xlu0 %63 }
  0x7f   :  { %v54_v40 = vpop.permute.xlu1 %53 }
  0x86   :  { %v186_v58 = vpop.permute.xlu0 %185 }
  0x87   :  { %v191_v62 = vpop.permute.xlu1 %190 }
  0x8e   :  { %v251_v5 = vpop.permute.xlu0 %250 }
  0x8f   :  { %v256_v7 = vpop.permute.xlu1 %255 }
  0xbf   :  { %v149_v38 = vpop.f32.mrf.mxu0 }
  0xc0   :  { %v150_v41 = vadd.f32 %v149_v38, %v54_v40 }
  0xc4   :  { %v155_v30 = vpop.f32.mrf.mxu3  ;;  %v152_v33 = vpop.f32.mrf.mxu2 }
  0xc5   :  { %v156_v35 = vadd.f32 %v155_v30, %v64_v32  ;;  %v153_v39 = vadd.f32 %v152_v33, %v59_v31 }
  0xcc   :  { %v158_v34 = vpop.f32.mrf.mxu3 }
  0xcd   :  { %v159_v36 = vadd.f32 %v158_v34, %v69_v29 }
  0xcf   :  { %344 = vtanh.f32 %v159_v36 }
  0xd0   :  { %346 = vtanh.f32 %v156_v35 }
  0xd1   :  { %348 = vtanh.f32 %v153_v39 }
  0xd2   :  { %350 = vtanh.f32 %v150_v41 }
  0xd5   :  { %v345_v42 = vpop.eup %344 }
  0xd6   :  { %218 = vmatpush.msra.mxu1 %v345_v42  ;;  %v347_v44 = vpop.eup %346 }
  0xd7   :  { %v349_v45 = vpop.eup %348 }
  0xd8   :  { %219 = vmatpush.msra.mxu1 %v347_v44  ;;  %v351_v47 = vpop.eup %350 }
  0xda   :  { %220 = vmatpush.msra.mxu1 %v349_v45 }
  0xdc   :  { %221 = vmatpush.msra.mxu1 %v351_v47 }
  0xdd   :  { %304 = vmatmul.msk.f32.vlgmr.msra.gmra.mxu1 %vm193_vm1, %v165_v46 }
  0xe5   :  { %305 = vmatmul.msk.f32.gmra.mxu1 %vm193_vm1, %v166_v49 }
  0xed   :  { %306 = vmatmul.msk.f32.gmra.mxu1 %vm193_vm1, %v167_v51 }
  0xf5   :  { %307 = vmatmul.msk.f32.gmra.mxu1 %vm193_vm1, %v168_v52 }
 0x15a   :  { %v223_v53 = vpop.f32.mrf.mxu1 }
 0x15b   :  { %v224_v59 = vadd.f32 %v223_v53, %v176_v54 }
 0x162   :  { %v226_v55 = vpop.f32.mrf.mxu1 }
 0x163   :  { %v227_v57 = vadd.f32 %v226_v55, %v181_v56 }
 0x165   :  { %352 = vtanh.f32 %v227_v57 }
 0x166   :  { %354 = vtanh.f32 %v224_v59 }
 0x16a   :  { %v229_v60 = vpop.f32.mrf.mxu1 }
 0x16b   :  { %v230_v61 = vadd.f32 %v229_v60, %v186_v58  ;;  %v353_v1 = vpop.eup %352 }
 0x16c   :  { %v355_v3 = vpop.eup %354  ;;  %v264_v6 = vmul.f32 %v353_v1, %v251_v5 }
 0x16d   :  { %356 = vtanh.f32 %v230_v61  ;;  %v263_v8 = vmul.f32 %v355_v3, %v246_v63 }
 0x16f   :  { %v267_v10 = vadd.f32 %v264_v6, %v263_v8 }
 0x172   :  { %v232_v0 = vpop.f32.mrf.mxu1 }
 0x173   :  { %v233_v2 = vadd.f32 %v232_v0, %v191_v62  ;;  %v357_v4 = vpop.eup %356 }
 0x174   :  { %v265_v9 = vmul.f32 %v357_v4, %v256_v7 }
 0x175   :  { %358 = vtanh.f32 %v233_v2 }
 0x176   :  { %v268_v13 = vadd.f32 %v267_v10, %v265_v9 }
 0x17b   :  { %v359_v11 = vpop.eup %358 }
 0x17c   :  { %v266_v14 = vmul.f32 %v359_v11, %v261_v12 }
 0x17e   :  { %v269_v15 = vadd.f32 %v268_v13, %v266_v14 }
 0x180   :  { %v270_v16 = vrot.slane %v269_v15, 4 }
 0x182   :  { %v271_v17 = vadd.f32 %v270_v16, %v269_v15 }
 0x184   :  { %v272_v18 = vrot.slane %v271_v17, 2 }
 0x186   :  { %v273_v19 = vadd.f32 %v272_v18, %v271_v17 }
 0x188   :  { %v274_v20 = vrot.slane %v273_v19, 1 }
 0x18a   :  { %v275_v22 = vadd.f32 %v274_v20, %v273_v19 }
 0x18c   :  { %v278_v23 = vadd.f32 %v277_v21, %v275_v22 }
 0x18e   :  { %279 = vst [vmem:[%s574_s7] sm:$0x1] %v278_v23 }

</bundles_post_ra>
